<compile_context>
chip_gen: v6e
topology: v6e:2x2x1
jax: 0.10.0
libtpu: 0.0.40
codegen_flags: <defaults>
</compile_context>

<pallas_src>
import numpy as np
import jax
import jax.numpy as jnp
from jax.experimental import pallas as pl
from jax.experimental.pallas import tpu as pltpu

# ----------------- hyper-parameters (self-consistent with the module) ----------
INPUT_SIZE = 16
HIDDEN = 32                          # hidden_size[-1]
KERNEL_SIZE = 5
CHANNELS = [4, 1]                    # TCN channels; last must be 1
TCN_LAYERS = len(CHANNELS)
C1 = CHANNELS[0]
L1 = HIDDEN - (KERNEL_SIZE - 1)                          # 28 (after conv layer 1)
L2 = L1 - (KERNEL_SIZE - 1)                              # 24 (after conv layer 2)
EACH_REC_OUT = HIDDEN - (KERNEL_SIZE - 1) * TCN_LAYERS   # 24
RECURRENT_TIMES = 48
EMBED_REC_TIMES = 8
EMBED_SIZE = 8
SEG = RECURRENT_TIMES // EMBED_REC_TIMES                 # 6
G = EMBED_SIZE + EMBED_REC_TIMES - 1                     # 15
OUTPUT_SIZE = 4
REC_ITERS = RECURRENT_TIMES // EACH_REC_OUT              # 2
TAIL = HIDDEN - EACH_REC_OUT                             # 8 carried lanes / step
BATCH = 8
BN_EPS = 1e-5

EMB_FLAT = EMBED_REC_TIMES * EMBED_SIZE                  # 64
CONV1_FLAT = C1 * L1                                     # 112

# ----------------- packed parameter layouts (128-lane slabs) -------------------
PACK_W = 128
# bf16 weight slab (row offsets 16-aligned for bf16 sublane tiling)
R_ENCW = 0                       # (16, 32)   encoder Linear (BN scale folded)
R_W1T = 16                       # (32, 112)  conv1 Toeplitz (BN scale folded)
R_W2T = 48                       # (112, 24)  conv2 Toeplitz (BN scale folded)
R_MWBD = 160                     # (48, 64)   embed Linear, block-diagonal
W_ROWS = 208
# f32 slab: folded biases + fused readout
RB_ENC, RB_B1, RB_B2, RB_MB, RB_OB = 0, 1, 2, 3, 4
R_BIG = 8                        # (64, 128)  [I | overlap-mean masks | masks@dec_w]
F_ROWS = 72
# kernel output slab columns (single lane-dense 128-wide store)
OUT_W = 128
OFF_EMB = 0                      # embedds   (64)
OFF_YS = OFF_EMB + EMB_FLAT      # embed_ys  (15)
OFF_OUT = 80                     # out       (4)

BB_CAP = 4096                    # ~12 MiB live VMEM incl. double buffering


# ------------------------------- kernel ----------------------------------------
def tcn_deae_kernel(x_ref, w_ref, f_ref, o_ref):
    """One batch tile: encoder -> TCN recurrence -> embed -> fused readout."""
    f32 = jnp.float32
    x = x_ref[...].astype(f32)

    # ----- encoder: Linear (eval-BN folded host-side) -> ReLU  (1 MXU matmul) --
    enc_w = w_ref[R_ENCW:R_ENCW + INPUT_SIZE, 0:HIDDEN].astype(f32)
    enc_b = f_ref[RB_ENC:RB_ENC + 1, 0:HIDDEN]
    h0 = jnp.maximum(jnp.dot(x, enc_w, preferred_element_type=f32) + enc_b, 0.0)

    # ----- TCN recurrence: per step ONE (BB,32)@(32,112) + ONE (BB,112)@(112,24)
    #       banded (Toeplitz) matmul, conv bias + BN folded ----------------------
    w1t = w_ref[R_W1T:R_W1T + HIDDEN, 0:CONV1_FLAT].astype(f32)
    b1r = f_ref[RB_B1:RB_B1 + 1, 0:CONV1_FLAT]
    w2t = w_ref[R_W2T:R_W2T + CONV1_FLAT, 0:L2].astype(f32)
    b2r = f_ref[RB_B2:RB_B2 + 1, 0:L2]

    rec_in = h0                                              # (BB, 32)
    chunks = []
    for it in range(REC_ITERS):
        a1 = jnp.maximum(
            jnp.dot(rec_in, w1t, preferred_element_type=f32) + b1r, 0.0)  # (BB,112)
        ck = jnp.dot(a1, w2t, preferred_element_type=f32) + b2r           # (BB,24)
        chunks.append(ck)
        if it + 1 < REC_ITERS:
            # next recurrence input = last HIDDEN lanes of [rec_in | ck]:
            # 8 carried lanes + fresh 24-lane chunk, fused into one 32-lane operand
            rec_in = jnp.concatenate([rec_in[:, EACH_REC_OUT:], ck], axis=-1)

    # ----- embed Linear: one (BB,48)@(48,64) block-diagonal matmul -------------
    act = jnp.maximum(jnp.concatenate(chunks, axis=-1), 0.0)              # (BB,48)
    mwbd = w_ref[R_MWBD:R_MWBD + RECURRENT_TIMES, 0:EMB_FLAT].astype(f32)
    mb = f_ref[RB_MB:RB_MB + 1, 0:EMB_FLAT]
    emb = jnp.dot(act, mwbd, preferred_element_type=f32) + mb             # (BB,64)

    # ----- fused f32 readout: [embedds | embed_ys | decoder out | pad] ---------
    big = f_ref[R_BIG:R_BIG + EMB_FLAT, 0:OUT_W]
    ob = f_ref[RB_OB:RB_OB + 1, 0:OUT_W]
    o_ref[...] = (jnp.dot(emb, big, preferred_element_type=f32) + ob
                  ).astype(o_ref.dtype)


# ------------------------------- wrapper ---------------------------------------
def _round_up(v, m):
    return ((v + m - 1) // m) * m


def _pick_batch_tile(B):
    """Batch tile (perf review items 1-3): single tile while tiny, otherwise
    >= 2 tiles (v7x megacore), 8-row aligned, capped for VMEM."""
    if B < 16:
        return B
    return min(BB_CAP, _round_up(pl.cdiv(B, 2), 8))


def _embedding_masks():
    # masks3[r, e, g] = 1 iff g == r + e  (step r predicts global slots [r, r+E))
    r = jnp.arange(EMBED_REC_TIMES)[:, None, None]
    e = jnp.arange(EMBED_SIZE)[None, :, None]
    g = jnp.arange(G)[None, None, :]
    return (g == r + e).astype(jnp.float32)


@jax.jit
def tcn_deae_slab(x, packed_w, packed_f):
    """Runs the kernel and returns the packed (B, 128) output slab
    [embedds | embed_ys | out | pad]; downstream code that can consume this
    directly avoids the re-slicing HBM pass entirely."""
    B = x.shape[0]
    BB = _pick_batch_tile(B)
    Bp = pl.cdiv(B, BB) * BB
    if Bp != B:                                  # ragged batch: pad, then slice off
        x = jnp.pad(x, ((0, Bp - B), (0, 0)))

    slab = pl.pallas_call(
        tcn_deae_kernel,
        grid=(Bp // BB,),
        in_specs=[
            pl.BlockSpec((BB, INPUT_SIZE), lambda i: (i, 0)),
            # constant block index -> both parameter slabs are DMA'd once
            pl.BlockSpec((W_ROWS, PACK_W), lambda i: (0, 0)),
            pl.BlockSpec((F_ROWS, PACK_W), lambda i: (0, 0)),
        ],
        out_specs=pl.BlockSpec((BB, OUT_W), lambda i: (i, 0)),
        out_shape=jax.ShapeDtypeStruct((Bp, OUT_W), jnp.float32),
        compiler_params=pltpu.CompilerParams(
            dimension_semantics=("parallel",),
            vmem_limit_bytes=32 * 1024 * 1024),
    )(x, packed_w, packed_f)
    return slab[:B] if Bp != B else slab


@jax.jit
def tcn_deae_forward(x, packed_w, packed_f):
    B = x.shape[0]
    slab = tcn_deae_slab(x, packed_w, packed_f)
    embedds = slab[:, OFF_EMB:OFF_EMB + EMB_FLAT].reshape(
        B, EMBED_REC_TIMES, EMBED_SIZE)
    ys = slab[:, OFF_YS:OFF_YS + G]
    out = slab[:, OFF_OUT:OFF_OUT + OUTPUT_SIZE]
    # same_ys is a pure one-hot scatter of embedds (perf review item 8): doing it
    # here keeps the kernel's output store 128 lanes instead of 256.
    same = jnp.einsum("bre,reg->brg", embedds, _embedding_masks())
    return {"same_ys": same, "embedds": embedds, "embed_ys": ys, "out": out}


# ------------------------- deterministic parameter init ------------------------
def _q_bf16(a):
    # Round-trip through bf16 so the bf16 weight slab is lossless for this init.
    return jnp.asarray(a, jnp.bfloat16).astype(jnp.float32)


def _bn_fold(n):
    f32 = jnp.float32
    # Eval-mode BatchNorm fold.  Running stats are chosen so the folded scale is
    # an exact power of two => (weight * scale) stays bf16-exact when packed.
    scale_tgt = jnp.array([0.5, 1.0, 2.0], f32)[jnp.arange(n) % 3]
    rvar = 1.0 + 0.1 * jnp.arange(n, dtype=f32) / max(n, 1)
    gamma = scale_tgt * jnp.sqrt(rvar + BN_EPS)
    beta = 0.02 * jnp.arange(n, dtype=f32)
    rmean = 0.01 * jnp.arange(n, dtype=f32)
    scale = gamma / jnp.sqrt(rvar + BN_EPS)      # == scale_tgt up to ~1 ulp
    shift = beta - rmean * scale
    return scale.reshape(1, n), shift.reshape(1, n)


def init_params(key):
    f32 = jnp.float32
    ks = jax.random.split(key, 5)

    enc_w = _q_bf16(0.2 * jax.random.normal(ks[0], (INPUT_SIZE, HIDDEN), f32))
    enc_b = (0.01 * jnp.arange(HIDDEN, dtype=f32)).reshape(1, HIDDEN)
    enc_s, enc_t = _bn_fold(HIDDEN)

    # Conv1d(1, C1, K): weight (C1, 1, K) -> stored as (C1, K)
    w1 = _q_bf16(0.3 * jax.random.normal(ks[1], (C1, KERNEL_SIZE), f32))
    b1 = (0.01 * jnp.arange(C1, dtype=f32)).reshape(1, C1)
    s1, t1 = _bn_fold(C1)

    # Conv1d(C1, 1, K): weight (1, C1, K) -> stored as (C1, K)
    w2 = _q_bf16(0.3 * jax.random.normal(ks[2], (C1, KERNEL_SIZE), f32))
    b2 = jnp.full((1, 1), 0.01, f32)
    s2, t2 = _bn_fold(1)

    emb_w = _q_bf16(0.3 * jax.random.normal(ks[3], (SEG, EMBED_SIZE), f32))
    emb_b = (0.01 * jnp.arange(EMBED_SIZE, dtype=f32)).reshape(1, EMBED_SIZE)

    dec_w = 0.3 * jax.random.normal(ks[4], (G, OUTPUT_SIZE), f32)   # stays f32
    dec_b = (0.01 * jnp.arange(OUTPUT_SIZE, dtype=f32)).reshape(1, OUTPUT_SIZE)

    # embed_select_masks (non-trainable): one-hot diagonal alignment
    masks3 = _embedding_masks()
    inv_counts = (1.0 / masks3.sum(axis=(0, 1))).reshape(1, G)
    masks2 = masks3.reshape(EMBED_REC_TIMES * EMBED_SIZE, G)

    return (enc_w, enc_b, enc_s, enc_t,
            w1, b1, s1, t1,
            w2, b2, s2, t2,
            emb_w, emb_b,
            masks2, inv_counts,
            dec_w, dec_b)


# ------------------ host-side folding into the two parameter slabs -------------
def pack_params(params):
    (enc_w, enc_b, enc_s, enc_t, w1, b1, s1, t1, w2, b2, s2, t2,
     emb_w, emb_b, masks2, inv_counts, dec_w, dec_b) = [
        np.asarray(p, np.float32) for p in params]

    W = np.zeros((W_ROWS, PACK_W), np.float32)    # -> bf16 weight slab
    F = np.zeros((F_ROWS, PACK_W), np.float32)    # -> f32 bias/readout slab

    # encoder Linear with eval-BN folded in
    W[R_ENCW:R_ENCW + INPUT_SIZE, 0:HIDDEN] = enc_w * enc_s
    F[RB_ENC, 0:HIDDEN] = (enc_b * enc_s + enc_t)[0]

    # TCN layer 1: Conv1d(1->C1, K, valid) + BN  ->  banded (32 x 112) matrix
    w1t = np.zeros((HIDDEN, CONV1_FLAT), np.float32)
    b1r = np.zeros((CONV1_FLAT,), np.float32)
    for co in range(C1):
        for p_ in range(L1):
            col = co * L1 + p_
            for dt in range(KERNEL_SIZE):
                w1t[p_ + dt, col] = w1[co, dt] * s1[0, co]
            b1r[col] = b1[0, co] * s1[0, co] + t1[0, co]
    W[R_W1T:R_W1T + HIDDEN, 0:CONV1_FLAT] = w1t
    F[RB_B1, 0:CONV1_FLAT] = b1r

    # TCN layer 2: Conv1d(C1->1, K, valid) + BN (no act) -> banded (112 x 24)
    w2t = np.zeros((CONV1_FLAT, L2), np.float32)
    for q in range(L2):
        for co in range(C1):
            for dt in range(KERNEL_SIZE):
                w2t[co * L1 + q + dt, q] = w2[co, dt] * s2[0, 0]
    W[R_W2T:R_W2T + CONV1_FLAT, 0:L2] = w2t
    F[RB_B2, 0:L2] = b2[0, 0] * s2[0, 0] + t2[0, 0]

    # embed Linear as block-diagonal (48 x 64) + tiled bias
    for q in range(EMBED_REC_TIMES):
        W[R_MWBD + q * SEG:R_MWBD + (q + 1) * SEG,
          q * EMBED_SIZE:(q + 1) * EMBED_SIZE] = emb_w
    F[RB_MB, 0:EMB_FLAT] = np.tile(emb_b[0], EMBED_REC_TIMES)

    # fused f32 readout: embedds | embed_ys (overlap mean) | decoder out
    masks_ys = masks2 * inv_counts                                # (64, 15)
    big = np.zeros((EMB_FLAT, PACK_W), np.float32)
    big[:, OFF_EMB:OFF_EMB + EMB_FLAT] = np.eye(EMB_FLAT, dtype=np.float32)
    big[:, OFF_YS:OFF_YS + G] = masks_ys
    big[:, OFF_OUT:OFF_OUT + OUTPUT_SIZE] = masks_ys @ dec_w
    F[R_BIG:R_BIG + EMB_FLAT, :] = big
    F[RB_OB, OFF_OUT:OFF_OUT + OUTPUT_SIZE] = dec_b[0]

    return jnp.asarray(W, jnp.bfloat16), jnp.asarray(F, jnp.float32)


# ------------------------------ pure-JAX reference ------------------------------
def reference_forward(x, params):
    (enc_w, enc_b, enc_s, enc_t, w1, b1, s1, t1, w2, b2, s2, t2,
     emb_w, emb_b, masks2, inv_counts, dec_w, dec_b) = params
    masks3 = masks2.reshape(EMBED_REC_TIMES, EMBED_SIZE, G)

    h0 = jnp.maximum((x @ enc_w + enc_b) * enc_s + enc_t, 0.0)

    def tcn(rin):
        o1 = jnp.stack(
            [sum(w1[co, dt] * rin[:, dt:dt + L1] for dt in range(KERNEL_SIZE)) + b1[0, co]
             for co in range(C1)], axis=1)
        o1 = jnp.maximum(o1 * s1[0][None, :, None] + t1[0][None, :, None], 0.0)
        o2 = sum(w2[co, dt] * o1[:, co, dt:dt + L2]
                 for co in range(C1) for dt in range(KERNEL_SIZE)) + b2[0, 0]
        return o2 * s2[0, 0] + t2[0, 0]

    cur = h0
    chunks = []
    for _ in range(REC_ITERS):
        o = tcn(cur)
        chunks.append(o)
        cur = jnp.concatenate([cur, o], axis=-1)[:, -HIDDEN:]
    rec = jnp.concatenate(chunks, axis=-1)

    act = jnp.maximum(rec, 0.0).reshape(-1, SEG)
    embedds = (act @ emb_w + emb_b).reshape(x.shape[0], EMBED_REC_TIMES, EMBED_SIZE)
    same = jnp.einsum("bre,reg->brg", embedds, masks3)
    ys = same.sum(axis=1) * inv_counts
    out = ys @ dec_w + dec_b
    return {"same_ys": same, "embedds": embedds, "embed_ys": ys, "out": out}


# ----------------------------------- main ---------------------------------------
if __name__ == "__main__":
    key = jax.random.PRNGKey(0)
    kx, kp = jax.random.split(key)
    params = init_params(kp)
    packed_w, packed_f = pack_params(params)

    # small-shape run (B = 8, single tile)
    x = jax.random.normal(kx, (BATCH, INPUT_SIZE), jnp.float32)
    out_dict = tcn_deae_forward(x, packed_w, packed_f)
    jax.block_until_ready(out_dict["out"])
    ref = reference_forward(x, params)
    for name in ("embedds", "same_ys", "embed_ys", "out"):
        assert out_dict[name].shape == ref[name].shape, name
        assert bool(jnp.allclose(out_dict[name], ref[name], atol=1e-4, rtol=1e-4)), name

    # multi-tile path: grid >= 2 ("parallel" across v7x cores) + ragged padding
    x2 = jax.random.normal(jax.random.PRNGKey(1), (41, INPUT_SIZE), jnp.float32)
    out2 = tcn_deae_forward(x2, packed_w, packed_f)
    jax.block_until_ready(out2["out"])
    ref2 = reference_forward(x2, params)
    for name in ("embedds", "same_ys", "embed_ys", "out"):
        assert bool(jnp.allclose(out2[name], ref2[name], atol=1e-4, rtol=1e-4)), name

    print("KERNEL_OK")
</pallas_src>

<mosaic_0001>
module attributes {stable_mosaic.version = 11 : i64} {
  func.func @tcn_deae_kernel(%arg0: i32, %arg1: memref<8x16xf32, #tpu.memory_space<vmem>>, %arg2: memref<208x128xbf16, #tpu.memory_space<vmem>>, %arg3: memref<72x128xf32, #tpu.memory_space<vmem>>, %arg4: memref<8x128xf32, #tpu.memory_space<vmem>>) attributes {dimension_semantics = [#tpu.dimension_semantics<parallel>], iteration_bounds = array<i64: 1>, scalar_prefetch = 0 : i64, scratch_operands = 0 : i64, tpu.core_type = #tpu.core_type<tc>, window_params = [{transform_indices = @transform_0, window_bounds = array<i64: 8, 16>}, {pipeline_mode = #tpu.pipeline_mode<synchronous>, transform_indices = @transform_1, window_bounds = array<i64: 208, 128>}, {pipeline_mode = #tpu.pipeline_mode<synchronous>, transform_indices = @transform_2, window_bounds = array<i64: 72, 128>}, {transform_indices = @transform_3, window_bounds = array<i64: 8, 128>}]} {
    %c0 = arith.constant 0 : index
    %c0_0 = arith.constant 0 : index
    %0 = vector.load %arg1[%c0, %c0_0] : memref<8x16xf32, #tpu.memory_space<vmem>>, vector<8x16xf32>
    %c0_1 = arith.constant 0 : index
    %c0_2 = arith.constant 0 : index
    %1 = vector.load %arg2[%c0_1, %c0_2] : memref<208x128xbf16, #tpu.memory_space<vmem>>, vector<16x32xbf16>
    %2 = arith.extf %1 : vector<16x32xbf16> to vector<16x32xf32>
    %c0_3 = arith.constant 0 : index
    %c0_4 = arith.constant 0 : index
    %3 = vector.load %arg3[%c0_3, %c0_4] : memref<72x128xf32, #tpu.memory_space<vmem>>, vector<1x32xf32>
    %cst = arith.constant dense<0.000000e+00> : vector<8x32xf32>
    %4 = tpu.matmul %0, %2, %cst {dimension_numbers = #tpu.dot_dimension_numbers<[1], [0], [0], [1], [0, 0, 1, 1], [], []>} : vector<8x16xf32>, vector<16x32xf32>, vector<8x32xf32> -> vector<8x32xf32>
    %5 = vector.broadcast %3 : vector<1x32xf32> to vector<8x32xf32>
    %6 = arith.addf %4, %5 : vector<8x32xf32>
    %cst_5 = arith.constant 0.000000e+00 : f32
    %7 = vector.broadcast %cst_5 : f32 to vector<8x32xf32>
    %8 = arith.maximumf %6, %7 : vector<8x32xf32>
    %c16 = arith.constant 16 : index
    %c0_6 = arith.constant 0 : index
    %9 = vector.load %arg2[%c16, %c0_6] : memref<208x128xbf16, #tpu.memory_space<vmem>>, vector<32x112xbf16>
    %10 = arith.extf %9 : vector<32x112xbf16> to vector<32x112xf32>
    %c1 = arith.constant 1 : index
    %c0_7 = arith.constant 0 : index
    %11 = vector.load %arg3[%c1, %c0_7] : memref<72x128xf32, #tpu.memory_space<vmem>>, vector<1x112xf32>
    %c48 = arith.constant 48 : index
    %c0_8 = arith.constant 0 : index
    %12 = vector.load %arg2[%c48, %c0_8] : memref<208x128xbf16, #tpu.memory_space<vmem>>, vector<112x24xbf16>
    %13 = arith.extf %12 : vector<112x24xbf16> to vector<112x24xf32>
    %c2 = arith.constant 2 : index
    %c0_9 = arith.constant 0 : index
    %14 = vector.load %arg3[%c2, %c0_9] : memref<72x128xf32, #tpu.memory_space<vmem>>, vector<1x24xf32>
    %cst_10 = arith.constant dense<0.000000e+00> : vector<8x112xf32>
    %15 = tpu.matmul %8, %10, %cst_10 {dimension_numbers = #tpu.dot_dimension_numbers<[1], [0], [0], [1], [0, 0, 1, 1], [], []>} : vector<8x32xf32>, vector<32x112xf32>, vector<8x112xf32> -> vector<8x112xf32>
    %16 = vector.broadcast %11 : vector<1x112xf32> to vector<8x112xf32>
    %17 = arith.addf %15, %16 : vector<8x112xf32>
    %cst_11 = arith.constant 0.000000e+00 : f32
    %18 = vector.broadcast %cst_11 : f32 to vector<8x112xf32>
    %19 = arith.maximumf %17, %18 : vector<8x112xf32>
    %cst_12 = arith.constant dense<0.000000e+00> : vector<8x24xf32>
    %20 = tpu.matmul %19, %13, %cst_12 {dimension_numbers = #tpu.dot_dimension_numbers<[1], [0], [0], [1], [0, 0, 1, 1], [], []>} : vector<8x112xf32>, vector<112x24xf32>, vector<8x24xf32> -> vector<8x24xf32>
    %21 = vector.broadcast %14 : vector<1x24xf32> to vector<8x24xf32>
    %22 = arith.addf %20, %21 : vector<8x24xf32>
    %23 = vector.extract_strided_slice %8 {offsets = [0, 24], sizes = [8, 8], strides = [1, 1]} : vector<8x32xf32> to vector<8x8xf32>
    %24 = tpu.concatenate %23, %22 in 1 : vector<8x8xf32>, vector<8x24xf32> -> vector<8x32xf32>
    %cst_13 = arith.constant dense<0.000000e+00> : vector<8x112xf32>
    %25 = tpu.matmul %24, %10, %cst_13 {dimension_numbers = #tpu.dot_dimension_numbers<[1], [0], [0], [1], [0, 0, 1, 1], [], []>} : vector<8x32xf32>, vector<32x112xf32>, vector<8x112xf32> -> vector<8x112xf32>
    %26 = vector.broadcast %11 : vector<1x112xf32> to vector<8x112xf32>
    %27 = arith.addf %25, %26 : vector<8x112xf32>
    %cst_14 = arith.constant 0.000000e+00 : f32
    %28 = vector.broadcast %cst_14 : f32 to vector<8x112xf32>
    %29 = arith.maximumf %27, %28 : vector<8x112xf32>
    %cst_15 = arith.constant dense<0.000000e+00> : vector<8x24xf32>
    %30 = tpu.matmul %29, %13, %cst_15 {dimension_numbers = #tpu.dot_dimension_numbers<[1], [0], [0], [1], [0, 0, 1, 1], [], []>} : vector<8x112xf32>, vector<112x24xf32>, vector<8x24xf32> -> vector<8x24xf32>
    %31 = vector.broadcast %14 : vector<1x24xf32> to vector<8x24xf32>
    %32 = arith.addf %30, %31 : vector<8x24xf32>
    %33 = tpu.concatenate %22, %32 in 1 : vector<8x24xf32>, vector<8x24xf32> -> vector<8x48xf32>
    %cst_16 = arith.constant 0.000000e+00 : f32
    %34 = vector.broadcast %cst_16 : f32 to vector<8x48xf32>
    %35 = arith.maximumf %33, %34 : vector<8x48xf32>
    %c160 = arith.constant 160 : index
    %c0_17 = arith.constant 0 : index
    %36 = vector.load %arg2[%c160, %c0_17] : memref<208x128xbf16, #tpu.memory_space<vmem>>, vector<48x64xbf16>
    %37 = arith.extf %36 : vector<48x64xbf16> to vector<48x64xf32>
    %c3 = arith.constant 3 : index
    %c0_18 = arith.constant 0 : index
    %38 = vector.load %arg3[%c3, %c0_18] : memref<72x128xf32, #tpu.memory_space<vmem>>, vector<1x64xf32>
    %cst_19 = arith.constant dense<0.000000e+00> : vector<8x64xf32>
    %39 = tpu.matmul %35, %37, %cst_19 {dimension_numbers = #tpu.dot_dimension_numbers<[1], [0], [0], [1], [0, 0, 1, 1], [], []>} : vector<8x48xf32>, vector<48x64xf32>, vector<8x64xf32> -> vector<8x64xf32>
    %40 = vector.broadcast %38 : vector<1x64xf32> to vector<8x64xf32>
    %41 = arith.addf %39, %40 : vector<8x64xf32>
    %c8 = arith.constant 8 : index
    %c0_20 = arith.constant 0 : index
    %42 = vector.load %arg3[%c8, %c0_20] : memref<72x128xf32, #tpu.memory_space<vmem>>, vector<64x128xf32>
    %c4 = arith.constant 4 : index
    %c0_21 = arith.constant 0 : index
    %43 = vector.load %arg3[%c4, %c0_21] : memref<72x128xf32, #tpu.memory_space<vmem>>, vector<1x128xf32>
    %cst_22 = arith.constant dense<0.000000e+00> : vector<8x128xf32>
    %44 = tpu.matmul %41, %42, %cst_22 {dimension_numbers = #tpu.dot_dimension_numbers<[1], [0], [0], [1], [0, 0, 1, 1], [], []>} : vector<8x64xf32>, vector<64x128xf32>, vector<8x128xf32> -> vector<8x128xf32>
    %45 = vector.broadcast %43 : vector<1x128xf32> to vector<8x128xf32>
    %46 = arith.addf %44, %45 : vector<8x128xf32>
    %c0_23 = arith.constant 0 : index
    %c0_24 = arith.constant 0 : index
    %47 = vector.load %arg4[%c0_23, %c0_24] : memref<8x128xf32, #tpu.memory_space<vmem>>, vector<8x128xf32>
    tpu.vector_store %arg4[%c0_23, %c0_24], %46 {strides = array<i32>} : memref<8x128xf32, #tpu.memory_space<vmem>>, vector<8x128xf32>,
    return
  }
  func.func @transform_0(%arg0: i32) -> (i32, i32) {
    %c0_i32 = arith.constant 0 : i32
    %c0_i32_0 = arith.constant 0 : i32
    return %arg0, %c0_i32 : i32, i32
  }
  func.func @transform_1(%arg0: i32) -> (i32, i32) {
    %c0_i32 = arith.constant 0 : i32
    %c0_i32_0 = arith.constant 0 : i32
    %c0_i32_1 = arith.constant 0 : i32
    return %c0_i32, %c0_i32_0 : i32, i32
  }
  func.func @transform_2(%arg0: i32) -> (i32, i32) {
    %c0_i32 = arith.constant 0 : i32
    %c0_i32_0 = arith.constant 0 : i32
    %c0_i32_1 = arith.constant 0 : i32
    return %c0_i32, %c0_i32_0 : i32, i32
  }
  func.func @transform_3(%arg0: i32) -> (i32, i32) {
    %c0_i32 = arith.constant 0 : i32
    %c0_i32_0 = arith.constant 0 : i32
    return %arg0, %c0_i32 : i32, i32
  }
}

</mosaic_0001>

<bundles_post_ra>
// kernel: tcn_deae_slab.1
= control target key start
LH: loop header
LB: loop body
LE: loop exit
PB: predicated region body
PF: predicated region fallthrough
CT: control target
= control target key end

     0   :  { %8 = vsyncpa [#allocation3], 0  ;;  %s1238_s0 = inlined_call_operand.hbm [shape: f32[8,16], index: 0, kind: input, shape index: {}]   ;;  %s1239_s1 = inlined_call_operand.hbm [shape: bf16[208,128], index: 1, kind: input, shape index: {}]   ;;  %s1240_s2 = inlined_call_operand.hbm [shape: f32[72,128], index: 2, kind: input, shape index: {}]   ;;  %s1241_s3 = inlined_call_operand.hbm [shape: f32[8,128], index: 3, kind: output, shape index: {}]  }
   0x1   :  { %9 = vsyncpa [#allocation6], 0 }
   0x2   :  { %10 = vsyncpa [#allocation4], 0  ;;  %s1050_s12 = smov [#allocation5]  }
   0x3   :  { %s26_s13 = sshll.u32 %s1050_s12, 4  ;;  %s27_s13 = int_to_ptr.vmem [resolvable:$true] %s26_s13 }
   0x4   :  { %s972_s14 = scalar_lea.vmem %s27_s13, 1664  ;;  %p977_p1 = scmp.lt.s32.totalorder %s27_s13, %s27_s13 }
   0x5   :  { %p973_p0 = scmp.ne.s32.totalorder %s27_s13, %s972_s14  ;;  %p978_p2 = scmp.lt.s32.totalorder %s972_s14, %s972_s14 }
   0x7   :  { %p979_p3 = por %p978_p2, %p977_p1 }
   0x9   :  { %p980_p4 = pnand %p979_p3, %p973_p0 }
   0xb   :  { %983 = shalt.err (!%p980_p4)
}
   0xc   :  { %s1051_s15 = smov 64   ;;  %s1052_s16 = smov 4  }
   0xd   :  { %32 = dma.hbm_to_vmem [thread:$0]  %s1239_s1, 1664, %s27_s13, [#allocation6], %s1051_s15, %s1051_s15, %s1052_s16  }
   0xe   :  { %s1053_s19 = smov [#allocation2]   ;;  %s1054_s21 = smov [#allocation7]  }
   0xf   :  { %s17_s20 = sshll.u32 %s1053_s19, 4  ;;  %s38_s22 = sshll.u32 %s1054_s21, 4  ;;  %s18_s20 = int_to_ptr.vmem [resolvable:$true] %s17_s20  ;;  %s39_s22 = int_to_ptr.vmem [resolvable:$true] %s38_s22 }
  0x10   :  { %s992_s23 = scalar_lea.vmem %s18_s20, 128  ;;  %p997_p6 = scmp.lt.s32.totalorder %s18_s20, %s18_s20 }
  0x11   :  { %p993_p5 = scmp.ne.s32.totalorder %s18_s20, %s992_s23  ;;  %p998_p7 = scmp.lt.s32.totalorder %s992_s23, %s992_s23 }
  0x13   :  { %p999_p8 = por %p998_p7, %p997_p6 }
  0x15   :  { %p1000_p9 = pnand %p999_p8, %p993_p5 }
  0x17   :  { %1003 = shalt.err (!%p1000_p9)
}
  0x18   :  { %20 = dma.hbm_to_vmem [thread:$0]  %s1238_s0, 128, %s18_s20, [#allocation3]  }
  0x19   :  { %s1012_s26 = scalar_lea.vmem %s39_s22, 1152  ;;  %p1017_p11 = scmp.lt.s32.totalorder %s39_s22, %s39_s22 }
  0x1a   :  { %p1013_p10 = scmp.ne.s32.totalorder %s39_s22, %s1012_s26  ;;  %p1018_p12 = scmp.lt.s32.totalorder %s1012_s26, %s1012_s26 }
  0x1c   :  { %p1019_p13 = por %p1018_p12, %p1017_p11 }
  0x1e   :  { %p1020_p0 = pnand %p1019_p13, %p1013_p10 }
  0x20   :  { %1023 = shalt.err (!%p1020_p0)
}
  0x21   :  { %s1055_s1 = smov 128   ;;  %s1056_s27 = smov 8  }
  0x22   :  { %44 = dma.hbm_to_vmem [thread:$0]  %s1240_s2, 1152, %s39_s22, [#allocation6], %s1055_s1, %s1055_s1, %s1056_s27  }
  0x23   :  { %1044 = dma.done.wait [#allocation3], 128  }
  0x24   :  { %1045 = vsyncadd [#allocation3], 4294967168 }
  0x25   :  { %1046 = dma.done.wait [#allocation6], 2816  }
  0x26   :  { %1047 = vsyncadd [#allocation6], 4294964480  ;;  %v1057_v0 = vmov 0.0   ;;  %vm1058_vm0 = vmmov 0   ;;  %v705_v1 = vld [vmem:[#allocation5] sm:$0xff]   ;;  %v1098_v2 = vld [vmem:[#allocation5 + $0x10] sm:$0xff]  }
  0x27   :  { %827 = vmatprep.subr.mxu1 %v1057_v0  ;;  %831 = vmatprep.mubr.msk.f32.mxu1 %vm1058_vm0, %v1057_v0  ;;  %v706_v3 = vunpack.c.l.bf16 %v705_v1  ;;  %v707_v4 = vunpack.c.h.bf16 %v705_v1  ;;  %v54_v5 = vld [vmem:[#allocation2] sm:$0xff]  ;;  %vm64_vm1 = vcmask 130048   ;;  %v715_v6 = vunpack.c.h.bf16 %v1098_v2  ;;  %v756_v8 = vld [vmem:[#allocation5 + $0x8] sm:$0xff]   ;;  %v1112_v12 = vld [vmem:[#allocation5 + $0x40] sm:$0xff]   ;;  %s1059_s0 = smov 104   ;;  %s1060_s2 = smov 24  }
  0x28   :  { %845 = vmatprep.subr.mxu0 %v1057_v0  ;;  %873 = vmatprep.mubr.msk.f32.mxu0 %vm1058_vm0, %v1057_v0  ;;  %v714_v7 = vunpack.c.l.bf16 %v1098_v2  ;;  %v711_v9 = vunpack.c.h.bf16 %v756_v8  ;;  %v710_v10 = vunpack.c.l.bf16 %v756_v8  ;;  %v1110_v11 = vld [vmem:[#allocation5 + $0x48] sm:$0xff]   ;;  %v739_v15 = vunpack.c.h.bf16 %v1112_v12  ;;  %v1120_v16 = vld [vmem:[#allocation5 + $0x38] sm:$0xff]   ;;  %v1133_v22 = vld [vmem:[#allocation5 + $0x30] sm:$0xff]   ;;  %s1061_s30 = smov [#allocation8]  }
  0x29   :  { %828 = vmatpush3.msra.mxu1 %v707_v4  ;;  %v742_v13 = vunpack.c.l.bf16 %v1110_v11  ;;  %v743_v14 = vunpack.c.h.bf16 %v1110_v11  ;;  %v738_v17 = vunpack.c.l.bf16 %v1112_v12  ;;  %v692_v18 = vld [vmem:[#allocation7] ss:$0 sm:$0xff]  ;;  %v735_v19 = vunpack.c.h.bf16 %v1120_v16  ;;  %v1152_v30 = vld [vmem:[#allocation5 + $0x20] sm:$0xff]   ;;  %v758_v34 = vld [vmem:[#allocation5 + $0x18] sm:$0xff]   ;;  %s682_s4 = sshll.u32 %s1061_s30, 4  ;;  %s683_s4 = int_to_ptr.vmem [resolvable:$true] %s682_s4 }
  0x2a   :  { %829 = vmatprep.subr.mxu1 %v1057_v0  ;;  %v734_v21 = vunpack.c.l.bf16 %v1120_v16  ;;  %vm181_vm2 = vcmask 261120   ;;  %v731_v26 = vunpack.c.h.bf16 %v1133_v22  ;;  %v1142_v27 = vld [vmem:[#allocation5 + $0x28] sm:$0xff]   ;;  %v730_v28 = vunpack.c.l.bf16 %v1133_v22  ;;  %v767_v53 = vld [vmem:[#allocation5 + $0x60] sm:$0xff]   ;;  %v766_v54 = vld [vmem:[#allocation5 + $0x58] sm:$0xff]   ;;  %s1024_s5 = scalar_lea.vmem %s683_s4, 128  ;;  %p1029_p2 = scmp.lt.s32.totalorder %s683_s4, %s683_s4 }
  0x2b   :  { %830 = vmatpush3.msra.mxu1 %v706_v3  ;;  %846 = vmatpush3.msra.mxu0 %v743_v14  ;;  %v727_v29 = vunpack.c.h.bf16 %v1142_v27  ;;  %v726_v31 = vunpack.c.l.bf16 %v1142_v27  ;;  %v723_v32 = vunpack.c.h.bf16 %v1152_v30  ;;  %v722_v33 = vunpack.c.l.bf16 %v1152_v30  ;;  %v694_v37 = vld [vmem:[#allocation7 + $0x1] ss:$0 sm:$0xff]  ;;  %v1176_v42 = vld [vmem:[#allocation7 + $0x2] ss:$0 sm:$0xff]  ;;  %v765_v59 = vld [vmem:[#allocation5 + $0x50] sm:$0xff]   ;;  %p1025_p1 = scmp.ne.s32.totalorder %s683_s4, %s1024_s5  ;;  %p1030_p3 = scmp.lt.s32.totalorder %s1024_s5, %s1024_s5 }
  0x2c   :  { %832 = vmatmul.mubr.msk.f32.vlgmr.msra.gmra.mxu1 %vm64_vm1, %v54_v5  ;;  %834 = vmatprep.subr.mxu1 %v1057_v0  ;;  %v719_v35 = vunpack.c.h.bf16 %v758_v34  ;;  %v718_v36 = vunpack.c.l.bf16 %v758_v34  ;;  %vm260_vm3 = vcmask 916480   ;;  %vm341_vm4 = vcmask 64512   ;;  %v595_v5 = vld [vmem:[#allocation7 + $0x40] sm:$0xff]  ;;  %v592_v8 = vld [vmem:[#allocation7 + $0x28] sm:$0xff]  ;;  %v589_v11 = vld [vmem:[#allocation7 + $0x10] sm:$0xff] }
  0x2d   :  { %835 = vmatpush3.msra.mxu1 %v715_v6  ;;  %842 = vmatprep.mubr.msk.f32.mxu1 %vm1058_vm0, %v1057_v0  ;;  %v755_v55 = vunpack.c.h.bf16 %v767_v53  ;;  %v754_v56 = vunpack.c.l.bf16 %v767_v53  ;;  %v751_v57 = vunpack.c.h.bf16 %v766_v54  ;;  %v750_v58 = vunpack.c.l.bf16 %v766_v54  ;;  %v588_v12 = vld [vmem:[#allocation7 + $0x8] sm:$0xff]  ;;  %p1031_p4 = por %p1030_p3, %p1029_p2 }
  0x2e   :  { %836 = vmatprep.subr.mxu1 %v1057_v0  ;;  %847 = vmatprep.subr.mxu0 %v1057_v0  ;;  %v747_v60 = vunpack.c.h.bf16 %v765_v59  ;;  %v746_v61 = vunpack.c.l.bf16 %v765_v59  ;;  %vm494_vm5 = vcmask 195584   ;;  %vm514_vm6 = vcmask 392192  }
  0x2f   :  { %837 = vmatpush3.msra.mxu1 %v714_v7  ;;  %848 = vmatpush3.msra.mxu0 %v742_v13  ;;  %vm601_vm7 = vcmask 523264   ;;  %p1032_p5 = pnand %p1031_p4, %p1025_p1 }
  0x30   :  { %838 = vmatprep.subr.mxu1 %v1057_v0  ;;  %849 = vmatprep.subr.mxu0 %v1057_v0 }
  0x31   :  { %839 = vmatpush3.msra.mxu1 %v711_v9  ;;  %850 = vmatpush3.msra.mxu0 %v739_v15 }
  0x32   :  { %840 = vmatprep.subr.mxu1 %v1057_v0  ;;  %851 = vmatprep.subr.mxu0 %v1057_v0 }
  0x33   :  { %841 = vmatpush3.msra.mxu1 %v710_v10  ;;  %852 = vmatpush3.msra.mxu0 %v738_v17 }
  0x34   :  { %876 = vmatprep.subr.mxu1 %v1057_v0  ;;  %853 = vmatprep.subr.mxu0 %v1057_v0 }
  0x35   :  { %854 = vmatpush3.msra.mxu0 %v735_v19 }
  0x36   :  { %855 = vmatprep.subr.mxu0 %v1057_v0 }
  0x37   :  { %856 = vmatpush3.msra.mxu0 %v734_v21 }
  0x38   :  { %857 = vmatprep.subr.mxu0 %v1057_v0 }
  0x39   :  { %858 = vmatpush3.msra.mxu0 %v731_v26 }
  0x3a   :  { %859 = vmatprep.subr.mxu0 %v1057_v0 }
  0x3b   :  { %860 = vmatpush3.msra.mxu0 %v730_v28 }
  0x3c   :  { %861 = vmatprep.subr.mxu0 %v1057_v0 }
  0x3d   :  { %862 = vmatpush3.msra.mxu0 %v727_v29 }
  0x3e   :  { %863 = vmatprep.subr.mxu0 %v1057_v0 }
  0x3f   :  { %864 = vmatpush3.msra.mxu0 %v726_v31 }
  0x40   :  { %865 = vmatprep.subr.mxu0 %v1057_v0 }
  0x41   :  { %866 = vmatpush3.msra.mxu0 %v723_v32 }
  0x42   :  { %867 = vmatprep.subr.mxu0 %v1057_v0 }
  0x43   :  { %868 = vmatpush3.msra.mxu0 %v722_v33 }
  0x44   :  { %869 = vmatprep.subr.mxu0 %v1057_v0 }
  0x45   :  { %870 = vmatpush3.msra.mxu0 %v719_v35 }
  0x46   :  { %871 = vmatprep.subr.mxu0 %v1057_v0 }
  0x47   :  { %872 = vmatpush3.msra.mxu0 %v718_v36 }
  0x48   :  { %918 = vmatprep.subr.mxu0 %v1057_v0 }
  0xec   :  { %v134_v20 = vpop.f32.mrf.mxu1 }
  0xed   :  { %v135_v23 = vadd.f32 %v692_v18, %v134_v20 }
  0xee   :  { %v833_v24 = vpop.f32.mrf.mxu1 }
  0xef   :  { %v138_v25 = vmax.f32 %v135_v23, 0.0 }
  0xf1   :  { %334 = vrot.lane.b32.xlu0 %v138_v25, %s1059_s0  ;;  %843 = vmatmul.mubr.msk.f32.vlgmr.msra.gmra.mxu1 %vm181_vm2, %v138_v25 }
  0xf2   :  { %877 = vmatpush3.msra.mxu1 %v715_v6  ;;  %884 = vmatprep.mubr.msk.f32.mxu1 %vm1058_vm0, %v1057_v0  ;;  %v594_v6 = vld [vmem:[#allocation7 + $0x38] sm:$0xff] }
  0xf3   :  { %878 = vmatprep.subr.mxu1 %v1057_v0 }
  0xf4   :  { %879 = vmatpush3.msra.mxu1 %v714_v7  ;;  %v593_v7 = vld [vmem:[#allocation7 + $0x30] sm:$0xff] }
  0xf5   :  { %880 = vmatprep.subr.mxu1 %v1057_v0 }
  0xf6   :  { %881 = vmatpush3.msra.mxu1 %v711_v9  ;;  %v591_v9 = vld [vmem:[#allocation7 + $0x20] sm:$0xff] }
  0xf7   :  { %882 = vmatprep.subr.mxu1 %v1057_v0 }
  0xf8   :  { %883 = vmatpush3.msra.mxu1 %v710_v10  ;;  %v590_v10 = vld [vmem:[#allocation7 + $0x18] sm:$0xff] }
  0xf9   :  { %887 = vmatprep.subr.mxu1 %v1057_v0 }
 0x163   :  { %v335_v46 = vpop.permute.xlu0 %334 }
 0x1b1   :  { %v251_v38 = vpop.f32.mrf.mxu1 }
 0x1b2   :  { %v252_v39 = vadd.f32 %v694_v37, %v251_v38 }
 0x1b3   :  { %v844_v40 = vpop.f32.mrf.mxu1 }
 0x1b4   :  { %v255_v41 = vmax.f32 %v252_v39, 0.0 }
 0x1b6   :  { %874 = vmatmul.mubr.msk.f32.vlgmr.msra.gmra.mxu0 %vm260_vm3, %v255_v41 }
 0x1b7   :  { %930 = vmatprep.mubr.msk.f32.mxu0 %vm1058_vm0, %v1057_v0  ;;  %919 = vmatpush3.msra.mxu0 %v755_v55 }
 0x1b8   :  { %920 = vmatprep.subr.mxu0 %v1057_v0 }
 0x1b9   :  { %921 = vmatpush3.msra.mxu0 %v754_v56 }
 0x1ba   :  { %922 = vmatprep.subr.mxu0 %v1057_v0 }
 0x1bb   :  { %923 = vmatpush3.msra.mxu0 %v751_v57 }
 0x1bc   :  { %924 = vmatprep.subr.mxu0 %v1057_v0 }
 0x1bd   :  { %925 = vmatpush3.msra.mxu0 %v750_v58 }
 0x1be   :  { %926 = vmatprep.subr.mxu0 %v1057_v0 }
 0x1bf   :  { %927 = vmatpush3.msra.mxu0 %v747_v60 }
 0x1c0   :  { %928 = vmatprep.subr.mxu0 %v1057_v0 }
 0x1c1   :  { %929 = vmatpush3.msra.mxu0 %v746_v61 }
 0x1c2   :  { %933 = vmatprep.subr.mxu0 %v1057_v0 }
 0x276   :  { %v330_v43 = vpop.f32.mrf.mxu0 }
 0x277   :  { %v1179_v44 = vadd.f32 %v1176_v42, %v330_v43 }
 0x278   :  { %v875_v45 = vpop.f32.mrf.mxu0 }
 0x279   :  { %338 = vrot.lane.b32.xlu0 %v1179_v44, %s1056_s27 }
 0x2eb   :  { %v339_v47 = vpop.permute.xlu0 %338 }
 0x2ec   :  { %v342_v48 = vsel %vm341_vm4, %v335_v46, %v339_v47 }
 0x2ed   :  { %885 = vmatmul.mubr.msk.f32.vlgmr.msra.gmra.mxu1 %vm181_vm2, %v342_v48 }
 0x2ee   :  { %888 = vmatpush3.msra.mxu1 %v743_v14  ;;  %915 = vmatprep.mubr.msk.f32.mxu1 %vm1058_vm0, %v1057_v0 }
 0x2ef   :  { %889 = vmatprep.subr.mxu1 %v1057_v0 }
 0x2f0   :  { %890 = vmatpush3.msra.mxu1 %v742_v13  ;;  %v700_v13 = vld [vmem:[#allocation7 + $0x3] ss:$0 sm:$0xff] }
 0x2f1   :  { %891 = vmatprep.subr.mxu1 %v1057_v0 }
 0x2f2   :  { %892 = vmatpush3.msra.mxu1 %v739_v15 }
 0x2f3   :  { %893 = vmatprep.subr.mxu1 %v1057_v0 }
 0x2f4   :  { %894 = vmatpush3.msra.mxu1 %v738_v17  ;;  %v702_v17 = vld [vmem:[#allocation7 + $0x4] ss:$0 sm:$0xff] }
 0x2f5   :  { %895 = vmatprep.subr.mxu1 %v1057_v0 }
 0x2f6   :  { %896 = vmatpush3.msra.mxu1 %v735_v19 }
 0x2f7   :  { %897 = vmatprep.subr.mxu1 %v1057_v0 }
 0x2f8   :  { %898 = vmatpush3.msra.mxu1 %v734_v21 }
 0x2f9   :  { %899 = vmatprep.subr.mxu1 %v1057_v0 }
 0x2fa   :  { %900 = vmatpush3.msra.mxu1 %v731_v26 }
 0x2fb   :  { %901 = vmatprep.subr.mxu1 %v1057_v0 }
 0x2fc   :  { %902 = vmatpush3.msra.mxu1 %v730_v28 }
 0x2fd   :  { %903 = vmatprep.subr.mxu1 %v1057_v0 }
 0x2fe   :  { %904 = vmatpush3.msra.mxu1 %v727_v29 }
 0x2ff   :  { %905 = vmatprep.subr.mxu1 %v1057_v0 }
 0x300   :  { %906 = vmatpush3.msra.mxu1 %v726_v31 }
 0x301   :  { %907 = vmatprep.subr.mxu1 %v1057_v0 }
 0x302   :  { %908 = vmatpush3.msra.mxu1 %v723_v32 }
 0x303   :  { %909 = vmatprep.subr.mxu1 %v1057_v0 }
 0x304   :  { %910 = vmatpush3.msra.mxu1 %v722_v33 }
 0x305   :  { %911 = vmatprep.subr.mxu1 %v1057_v0 }
 0x306   :  { %912 = vmatpush3.msra.mxu1 %v719_v35 }
 0x307   :  { %913 = vmatprep.subr.mxu1 %v1057_v0 }
 0x308   :  { %914 = vmatpush3.msra.mxu1 %v718_v36 }
 0x3ad   :  { %v412_v49 = vpop.f32.mrf.mxu1 }
 0x3ae   :  { %v413_v50 = vadd.f32 %v694_v37, %v412_v49 }
 0x3af   :  { %v886_v51 = vpop.f32.mrf.mxu1 }
 0x3b0   :  { %v416_v52 = vmax.f32 %v413_v50, 0.0 }
 0x3b2   :  { %916 = vmatmul.mubr.msk.f32.vlgmr.msra.gmra.mxu1 %vm260_vm3, %v416_v52 }
 0x472   :  { %v486_v62 = vpop.f32.mrf.mxu1 }
 0x473   :  { %v487_v63 = vadd.f32 %v1176_v42, %v486_v62 }
 0x474   :  { %v917_v1 = vpop.f32.mrf.mxu1 }
 0x475   :  { %491 = vrot.lane.b32.xlu1 %v487_v63, %s1060_s2 }
 0x4e7   :  { %v492_v2 = vpop.permute.xlu1 %491 }
 0x4e8   :  { %v495_v3 = vsel %vm494_vm5, %v1179_v44, %v492_v2 }
 0x4e9   :  { %v496_v4 = vmax.f32 %v495_v3, 0.0 }
 0x4eb   :  { %931 = vmatmul.mubr.msk.f32.vlgmr.msra.gmra.mxu0 %vm514_vm6, %v496_v4 }
 0x4ec   :  { %934 = vmatpush3.msra.mxu0 %v595_v5  ;;  %949 = vmatprep.mubr.msk.f32.mxu0 %vm1058_vm0, %v1057_v0 }
 0x4ed   :  { %935 = vmatprep.subr.mxu0 %v1057_v0 }
 0x4ee   :  { %936 = vmatpush3.msra.mxu0 %v594_v6 }
 0x4ef   :  { %937 = vmatprep.subr.mxu0 %v1057_v0 }
 0x4f0   :  { %938 = vmatpush3.msra.mxu0 %v593_v7 }
 0x4f1   :  { %939 = vmatprep.subr.mxu0 %v1057_v0 }
 0x4f2   :  { %940 = vmatpush3.msra.mxu0 %v592_v8 }
 0x4f3   :  { %941 = vmatprep.subr.mxu0 %v1057_v0 }
 0x4f4   :  { %942 = vmatpush3.msra.mxu0 %v591_v9 }
 0x4f5   :  { %943 = vmatprep.subr.mxu0 %v1057_v0 }
 0x4f6   :  { %944 = vmatpush3.msra.mxu0 %v590_v10 }
 0x4f7   :  { %945 = vmatprep.subr.mxu0 %v1057_v0 }
 0x4f8   :  { %946 = vmatpush3.msra.mxu0 %v589_v11 }
 0x4f9   :  { %947 = vmatprep.subr.mxu0 %v1057_v0 }
 0x4fa   :  { %948 = vmatpush3.msra.mxu0 %v588_v12 }
 0x5ab   :  { %v584_v14 = vpop.f32.mrf.mxu0 }
 0x5ac   :  { %v585_v15 = vadd.f32 %v700_v13, %v584_v14 }
 0x5ad   :  { %v932_v16 = vpop.f32.mrf.mxu0 }
 0x5ae   :  { %950 = vmatmul.mubr.msk.f32.vlgmr.msra.gmra.mxu0 %vm601_vm7, %v585_v15 }
 0x66e   :  { %v671_v18 = vpop.f32.mrf.mxu0 }
 0x66f   :  { %v672_v19 = vadd.f32 %v702_v17, %v671_v18 }
 0x670   :  { %v951_v20 = vpop.f32.mrf.mxu0 }
 0x671   :  { %675 = vst [vmem:[#allocation8] sm:$0xff] %v672_v19 }
 0x672   :  { %1035 = shalt.err (!%p1032_p5)
}
 0x673   :  { %685 = dma.vmem_to_hbm [thread:$0]  %s683_s4, 128, %s1241_s3, [#allocation4]  }
 0x674   :  { %1048 = dma.done.wait [#allocation4], 128  }
 0x675   :  { %1049 = vsyncadd [#allocation4], 4294967168 }
 0x676   :  { %689 = vsyncpa [#allocation3], 1 }
 0x677   :  { %690 = vsyncpa [#allocation6], 1 }
 0x678   :  { %691 = vsyncpa [#allocation4], 1 }

</bundles_post_ra>
